<compile_context>
chip_gen: v6e
topology: v6e:2x2x1
jax: 0.10.0
libtpu: 0.0.40
codegen_flags: <defaults>
</compile_context>

<pallas_src>
import functools
import math

import jax
import jax.numpy as jnp
from jax.experimental import pallas as pl
from jax.experimental.pallas import tpu as pltpu


def _sliding_window_sum(ap, out_len, k, axis):
    """Width-k sliding sum along `axis` of `ap` (length out_len + k - 1).

    Log-tree / doubling decomposition: floor(log2(k)) + popcount(k) - 1
    shifted adds instead of k - 1 (4 instead of 6 for k = 7).
    """
    def sl(arr, start, length):
        idx = [slice(None)] * arr.ndim
        idx[axis] = slice(start, start + length)
        return arr[tuple(idx)]

    # partials[i]: sliding sums of width 2**i.
    partials = [ap]
    lengths = [out_len + k - 1]
    width = 1
    while width * 2 <= k:
        prev, plen = partials[-1], lengths[-1]
        new_len = plen - width
        partials.append(sl(prev, 0, new_len) + sl(prev, width, new_len))
        lengths.append(new_len)
        width *= 2

    # Combine the binary decomposition of k, widest chunk first.
    acc = None
    offset = 0
    for i in range(len(partials) - 1, -1, -1):
        piece_w = 1 << i
        if k & piece_w:
            piece = sl(partials[i], offset, out_len)
            acc = piece if acc is None else acc + piece
            offset += piece_w
    return acc


def _box_filter(a, radius):
    """Zero-padded (2r+1)x(2r+1) window sum over the last two axes of `a`.

    Equivalent to F.conv2d(a, ones(1,1,k,k), stride=1, padding=r) applied to
    each leading slice.  Separable shift-and-add: exact f32, no MXU.
    """
    if radius == 0:
        return a
    *lead, h, w = a.shape
    k = 2 * radius + 1

    # Lane (last) axis pass.
    zw = jnp.zeros((*lead, h, radius), a.dtype)
    ap = jnp.concatenate([zw, a, zw], axis=-1)          # (..., h, w + 2r)
    a = _sliding_window_sum(ap, w, k, axis=-1)

    # Sublane (second-to-last) axis pass.
    zh = jnp.zeros((*lead, radius, w), a.dtype)
    ap = jnp.concatenate([zh, a, zh], axis=-2)          # (..., h + 2r, w)
    return _sliding_window_sum(ap, h, k, axis=-2)


def _lncc_kernel(x_ref, y_ref, o_ref, *, radius, inv_win, img_w, gap, masked):
    nb, _, h, wp = x_ref.shape

    x = jnp.squeeze(x_ref[...], axis=1).astype(jnp.float32)   # (nb, H, Wp)
    y = jnp.squeeze(y_ref[...], axis=1).astype(jnp.float32)

    # Fused box sums of [x, y, x*x, y*y, x*y] for every image in this step:
    # one shift-and-add pass over a (5*nb, H, Wp) stack (halos built once).
    stacked = jnp.stack([x, y, x * x, y * y, x * y], axis=0)
    stacked = stacked.reshape(5 * nb, h, wp)
    s = _box_filter(stacked, radius).reshape(5, nb, h, wp)
    x_sum, y_sum, xsq_sum, ysq_sum, xy_sum = (s[i] for i in range(5))

    # Algebraically simplified statistics (identical to the reference math
    # up to f32 rounding).
    cov = xy_sum - x_sum * y_sum * inv_win
    x_var = xsq_sum - x_sum * x_sum * inv_win
    y_var = ysq_sum - y_sum * y_sum * inv_win

    denom = x_var * y_var + 1e-5
    inv = pl.reciprocal(denom, approx=True)      # EUP slot (idle otherwise)
    inv = inv * (2.0 - denom * inv)              # one Newton step
    lncc = (cov * cov) * inv

    if masked:
        # Zero out the inter-image gap lanes of the packed layout
        # (static comparisons only; no integer modulo needed).
        lane = jax.lax.broadcasted_iota(jnp.int32, (1, 1, wp), 2)
        keep = jnp.zeros((1, 1, wp), jnp.bool_)
        npack = wp // (img_w + gap) if (img_w + gap) > 0 else 1
        for i in range(npack):
            start = i * (img_w + gap)
            keep = keep | ((lane >= start) & (lane < start + img_w))
        lncc = jnp.where(keep, lncc, 0.0)

    # Sublane-reduce only; the cheap cross-lane sum happens once in JAX.
    o_ref[...] = jnp.sum(lncc, axis=1, keepdims=True)          # (nb, 1, Wp)


def _rows_per_step(n_rows, h, wp, in_itemsize):
    """Packed image-rows per grid step, bounded by a VMEM working-set budget."""
    # Per-row f32 intermediates: x, y, the 5-map stack, halo-padded stacks,
    # box outputs and cov/var/lncc temporaries (~16 HxWp maps), plus
    # 2 inputs x 2 pipeline buffers in the native input dtype.
    per_row = 16 * h * wp * 4 + 2 * 2 * h * wp * max(int(in_itemsize), 1)
    budget = 20 << 20                     # stays under the 32 MiB limit below
    nb = max(1, min(n_rows, budget // max(per_row, 1)))
    # Keep >=2 grid steps when possible so v7x can shard the batch axis
    # across both TensorCores ("parallel" semantics).
    if n_rows >= 2:
        nb = min(nb, max(1, n_rows // 2))
    while n_rows % nb:
        nb -= 1
    return nb


@functools.partial(jax.jit, static_argnames=("window_size",))
def lncc_loss(x, y, window_size=7):
    """x, y: (N, 1, H, W) arrays.  Returns the scalar LNCC loss (float32)."""
    # TODO(synk): optional x_mask / y_mask pre-multiplies of the PyTorch
    # forward are not implemented (None path only).
    assert x.shape == y.shape and x.ndim == 4 and x.shape[1] == 1
    n, _, h, w = x.shape
    radius = math.floor(window_size / 2)
    inv_win = 1.0 / float(window_size * window_size)
    # TODO(synk): very large H would need H-axis halo tiling (radius-row
    # overlap per block) instead of whole-image H blocks; not implemented.

    # Lane packing: for narrow images, place g images side by side along the
    # lane axis separated by a radius-wide zero gap (matches the reference's
    # zero padding), so each 128-lane vreg does useful work.
    gap = radius
    if w < 128 and n > 1 and (w + gap) <= 128:
        g = min(n, max(1, 128 // (w + gap)))
    else:
        g = 1

    if g > 1:
        n_rows = (n + g - 1) // g
        n_pad = n_rows * g - n
        if n_pad:
            cfg = ((0, n_pad), (0, 0), (0, 0), (0, 0))
            x = jnp.pad(x, cfg)           # zero images contribute 0 to the sum
            y = jnp.pad(y, cfg)
        wp = g * (w + gap)

        def pack(a):
            a = a.reshape(n_rows, g, h, w)
            a = jnp.pad(a, ((0, 0), (0, 0), (0, 0), (0, gap)))
            a = jnp.transpose(a, (0, 2, 1, 3))           # (rows, H, g, W+gap)
            return a.reshape(n_rows, 1, h, wp)

        xp, yp = pack(x), pack(y)
        masked = True
    else:
        n_rows, wp = n, w
        xp, yp = x, y
        masked = False

    nb = _rows_per_step(n_rows, h, wp, jnp.dtype(x.dtype).itemsize)
    kernel = functools.partial(
        _lncc_kernel, radius=radius, inv_win=inv_win,
        img_w=w, gap=gap, masked=masked)

    partials = pl.pallas_call(
        kernel,
        out_shape=jax.ShapeDtypeStruct((n_rows, 1, wp), jnp.float32),
        grid_spec=pltpu.PrefetchScalarGridSpec(
            num_scalar_prefetch=0,
            grid=(n_rows // nb,),
            in_specs=[
                pl.BlockSpec((nb, 1, h, wp), lambda b: (b, 0, 0, 0)),
                pl.BlockSpec((nb, 1, h, wp), lambda b: (b, 0, 0, 0)),
            ],
            out_specs=pl.BlockSpec((nb, 1, wp), lambda b: (b, 0, 0)),
        ),
        compiler_params=pltpu.CompilerParams(
            dimension_semantics=("parallel",),     # no cross-step state
            vmem_limit_bytes=32 << 20,             # explicit: fits v5e/v6e/v7x
        ),
    )(xp, yp)

    total = n * h * w                              # mean over N*C*H*W, C == 1
    return -jnp.sum(partials) / jnp.float32(total)


def _lncc_loss_ref(x, y, window_size=7):
    """Pure-JAX reference (same math as the PyTorch module, C == 1)."""
    r = window_size // 2
    filt = jnp.ones((1, 1, window_size, window_size), jnp.float32)

    def box(a):
        return jax.lax.conv_general_dilated(
            a, filt, window_strides=(1, 1), padding=((r, r), (r, r)),
            dimension_numbers=("NCHW", "OIHW", "NCHW"),
            precision=jax.lax.Precision.HIGHEST)

    xf = x.astype(jnp.float32)
    yf = y.astype(jnp.float32)
    win = float(window_size * window_size)
    x_sum, y_sum = box(xf), box(yf)
    xsq_sum, ysq_sum, xy_sum = box(xf * xf), box(yf * yf), box(xf * yf)
    x_mu, y_mu = x_sum / win, y_sum / win
    cov = xy_sum - y_mu * x_sum - x_mu * y_sum + x_mu * y_mu * win
    x_var = xsq_sum - 2.0 * x_mu * x_sum + x_mu * x_mu * win
    y_var = ysq_sum - 2.0 * y_mu * y_sum + y_mu * y_mu * win
    lncc = cov * cov / (x_var * y_var + 1e-5)
    return -jnp.mean(lncc)


if __name__ == "__main__":
    key = jax.random.PRNGKey(0)
    kx, ky = jax.random.split(key)
    N, C, H, W = 2, 1, 16, 16
    x = jax.random.normal(kx, (N, C, H, W), dtype=jnp.float32)
    y = jax.random.normal(ky, (N, C, H, W), dtype=jnp.float32)

    loss = lncc_loss(x, y, window_size=7)
    jax.block_until_ready(loss)

    ref = _lncc_loss_ref(x, y, window_size=7)
    assert jnp.allclose(loss, ref, rtol=1e-4, atol=1e-6), (loss, ref)

    print("KERNEL_OK")
</pallas_src>

<mosaic_0001>
module attributes {stable_mosaic.version = 11 : i64} {
  func.func @_lncc_kernel(%arg0: i32, %arg1: memref<1x1x16x38xf32, #tpu.memory_space<vmem>>, %arg2: memref<1x1x16x38xf32, #tpu.memory_space<vmem>>, %arg3: memref<1x1x38xf32, #tpu.memory_space<vmem>>) attributes {dimension_semantics = [#tpu.dimension_semantics<parallel>], iteration_bounds = array<i64: 1>, scalar_prefetch = 0 : i64, scratch_operands = 0 : i64, tpu.core_type = #tpu.core_type<tc>, window_params = [{transform_indices = @transform_0, window_bounds = array<i64: 1, 1, 16, 38>}, {transform_indices = @transform_1, window_bounds = array<i64: 1, 1, 16, 38>}, {transform_indices = @transform_2, window_bounds = array<i64: 1, 1, 38>}]} {
    %c0 = arith.constant 0 : index
    %c0_0 = arith.constant 0 : index
    %c0_1 = arith.constant 0 : index
    %c0_2 = arith.constant 0 : index
    %0 = vector.load %arg1[%c0, %c0_0, %c0_1, %c0_2] : memref<1x1x16x38xf32, #tpu.memory_space<vmem>>, vector<1x1x16x38xf32>
    %1 = vector.shape_cast %0 : vector<1x1x16x38xf32> to vector<1x16x38xf32>
    %c0_3 = arith.constant 0 : index
    %c0_4 = arith.constant 0 : index
    %c0_5 = arith.constant 0 : index
    %c0_6 = arith.constant 0 : index
    %2 = vector.load %arg2[%c0_3, %c0_4, %c0_5, %c0_6] : memref<1x1x16x38xf32, #tpu.memory_space<vmem>>, vector<1x1x16x38xf32>
    %3 = vector.shape_cast %2 : vector<1x1x16x38xf32> to vector<1x16x38xf32>
    %4 = arith.mulf %1, %1 : vector<1x16x38xf32>
    %5 = arith.mulf %3, %3 : vector<1x16x38xf32>
    %6 = arith.mulf %1, %3 : vector<1x16x38xf32>
    %7 = vector.shape_cast %1 : vector<1x16x38xf32> to vector<1x1x16x38xf32>
    %8 = vector.shape_cast %3 : vector<1x16x38xf32> to vector<1x1x16x38xf32>
    %9 = vector.shape_cast %4 : vector<1x16x38xf32> to vector<1x1x16x38xf32>
    %10 = vector.shape_cast %5 : vector<1x16x38xf32> to vector<1x1x16x38xf32>
    %11 = vector.shape_cast %6 : vector<1x16x38xf32> to vector<1x1x16x38xf32>
    %12 = tpu.concatenate %7, %8, %9, %10, %11 in 0 : vector<1x1x16x38xf32>, vector<1x1x16x38xf32>, vector<1x1x16x38xf32>, vector<1x1x16x38xf32>, vector<1x1x16x38xf32> -> vector<5x1x16x38xf32>
    %13 = vector.shape_cast %12 : vector<5x1x16x38xf32> to vector<5x16x38xf32>
    %cst = arith.constant 0.000000e+00 : f32
    %14 = vector.broadcast %cst : f32 to vector<5x16x3xf32>
    %15 = tpu.concatenate %14, %13, %14 in 2 : vector<5x16x3xf32>, vector<5x16x38xf32>, vector<5x16x3xf32> -> vector<5x16x44xf32>
    %16 = vector.extract_strided_slice %15 {offsets = [0, 0, 0], sizes = [5, 16, 43], strides = [1, 1, 1]} : vector<5x16x44xf32> to vector<5x16x43xf32>
    %17 = vector.extract_strided_slice %15 {offsets = [0, 0, 1], sizes = [5, 16, 43], strides = [1, 1, 1]} : vector<5x16x44xf32> to vector<5x16x43xf32>
    %18 = arith.addf %16, %17 : vector<5x16x43xf32>
    %19 = vector.extract_strided_slice %18 {offsets = [0, 0, 0], sizes = [5, 16, 41], strides = [1, 1, 1]} : vector<5x16x43xf32> to vector<5x16x41xf32>
    %20 = vector.extract_strided_slice %18 {offsets = [0, 0, 2], sizes = [5, 16, 41], strides = [1, 1, 1]} : vector<5x16x43xf32> to vector<5x16x41xf32>
    %21 = arith.addf %19, %20 : vector<5x16x41xf32>
    %22 = vector.extract_strided_slice %21 {offsets = [0, 0, 0], sizes = [5, 16, 38], strides = [1, 1, 1]} : vector<5x16x41xf32> to vector<5x16x38xf32>
    %23 = vector.extract_strided_slice %18 {offsets = [0, 0, 4], sizes = [5, 16, 38], strides = [1, 1, 1]} : vector<5x16x43xf32> to vector<5x16x38xf32>
    %24 = arith.addf %22, %23 : vector<5x16x38xf32>
    %25 = vector.extract_strided_slice %15 {offsets = [0, 0, 6], sizes = [5, 16, 38], strides = [1, 1, 1]} : vector<5x16x44xf32> to vector<5x16x38xf32>
    %26 = arith.addf %24, %25 : vector<5x16x38xf32>
    %cst_7 = arith.constant 0.000000e+00 : f32
    %27 = vector.broadcast %cst_7 : f32 to vector<5x3x38xf32>
    %28 = tpu.concatenate %27, %26, %27 in 1 : vector<5x3x38xf32>, vector<5x16x38xf32>, vector<5x3x38xf32> -> vector<5x22x38xf32>
    %29 = vector.extract_strided_slice %28 {offsets = [0, 0, 0], sizes = [5, 21, 38], strides = [1, 1, 1]} : vector<5x22x38xf32> to vector<5x21x38xf32>
    %30 = vector.extract_strided_slice %28 {offsets = [0, 1, 0], sizes = [5, 21, 38], strides = [1, 1, 1]} : vector<5x22x38xf32> to vector<5x21x38xf32>
    %31 = arith.addf %29, %30 : vector<5x21x38xf32>
    %32 = vector.extract_strided_slice %31 {offsets = [0, 0, 0], sizes = [5, 19, 38], strides = [1, 1, 1]} : vector<5x21x38xf32> to vector<5x19x38xf32>
    %33 = vector.extract_strided_slice %31 {offsets = [0, 2, 0], sizes = [5, 19, 38], strides = [1, 1, 1]} : vector<5x21x38xf32> to vector<5x19x38xf32>
    %34 = arith.addf %32, %33 : vector<5x19x38xf32>
    %35 = vector.extract_strided_slice %34 {offsets = [0, 0, 0], sizes = [5, 16, 38], strides = [1, 1, 1]} : vector<5x19x38xf32> to vector<5x16x38xf32>
    %36 = vector.extract_strided_slice %31 {offsets = [0, 4, 0], sizes = [5, 16, 38], strides = [1, 1, 1]} : vector<5x21x38xf32> to vector<5x16x38xf32>
    %37 = arith.addf %35, %36 : vector<5x16x38xf32>
    %38 = vector.extract_strided_slice %28 {offsets = [0, 6, 0], sizes = [5, 16, 38], strides = [1, 1, 1]} : vector<5x22x38xf32> to vector<5x16x38xf32>
    %39 = arith.addf %37, %38 : vector<5x16x38xf32>
    %40 = vector.shape_cast %39 : vector<5x16x38xf32> to vector<5x1x16x38xf32>
    %41 = vector.extract_strided_slice %40 {offsets = [0, 0, 0, 0], sizes = [1, 1, 16, 38], strides = [1, 1, 1, 1]} : vector<5x1x16x38xf32> to vector<1x1x16x38xf32>
    %42 = vector.shape_cast %41 : vector<1x1x16x38xf32> to vector<1x16x38xf32>
    %43 = vector.extract_strided_slice %40 {offsets = [1, 0, 0, 0], sizes = [1, 1, 16, 38], strides = [1, 1, 1, 1]} : vector<5x1x16x38xf32> to vector<1x1x16x38xf32>
    %44 = vector.shape_cast %43 : vector<1x1x16x38xf32> to vector<1x16x38xf32>
    %45 = vector.extract_strided_slice %40 {offsets = [2, 0, 0, 0], sizes = [1, 1, 16, 38], strides = [1, 1, 1, 1]} : vector<5x1x16x38xf32> to vector<1x1x16x38xf32>
    %46 = vector.shape_cast %45 : vector<1x1x16x38xf32> to vector<1x16x38xf32>
    %47 = vector.extract_strided_slice %40 {offsets = [3, 0, 0, 0], sizes = [1, 1, 16, 38], strides = [1, 1, 1, 1]} : vector<5x1x16x38xf32> to vector<1x1x16x38xf32>
    %48 = vector.shape_cast %47 : vector<1x1x16x38xf32> to vector<1x16x38xf32>
    %49 = vector.extract_strided_slice %40 {offsets = [4, 0, 0, 0], sizes = [1, 1, 16, 38], strides = [1, 1, 1, 1]} : vector<5x1x16x38xf32> to vector<1x1x16x38xf32>
    %50 = vector.shape_cast %49 : vector<1x1x16x38xf32> to vector<1x16x38xf32>
    %51 = arith.mulf %42, %44 : vector<1x16x38xf32>
    %cst_8 = arith.constant 0.0204081628 : f32
    %52 = vector.broadcast %cst_8 : f32 to vector<1x16x38xf32>
    %53 = arith.mulf %51, %52 : vector<1x16x38xf32>
    %54 = arith.subf %50, %53 : vector<1x16x38xf32>
    %55 = arith.mulf %42, %42 : vector<1x16x38xf32>
    %cst_9 = arith.constant 0.0204081628 : f32
    %56 = vector.broadcast %cst_9 : f32 to vector<1x16x38xf32>
    %57 = arith.mulf %55, %56 : vector<1x16x38xf32>
    %58 = arith.subf %46, %57 : vector<1x16x38xf32>
    %59 = arith.mulf %44, %44 : vector<1x16x38xf32>
    %cst_10 = arith.constant 0.0204081628 : f32
    %60 = vector.broadcast %cst_10 : f32 to vector<1x16x38xf32>
    %61 = arith.mulf %59, %60 : vector<1x16x38xf32>
    %62 = arith.subf %48, %61 : vector<1x16x38xf32>
    %63 = arith.mulf %58, %62 : vector<1x16x38xf32>
    %cst_11 = arith.constant 9.99999974E-6 : f32
    %64 = vector.broadcast %cst_11 : f32 to vector<1x16x38xf32>
    %65 = arith.addf %63, %64 : vector<1x16x38xf32>
    %66 = tpu.reciprocal %65 {approx = true} : vector<1x16x38xf32> -> vector<1x16x38xf32>
    %67 = arith.mulf %65, %66 : vector<1x16x38xf32>
    %cst_12 = arith.constant 2.000000e+00 : f32
    %68 = vector.broadcast %cst_12 : f32 to vector<1x16x38xf32>
    %69 = arith.subf %68, %67 : vector<1x16x38xf32>
    %70 = arith.mulf %66, %69 : vector<1x16x38xf32>
    %71 = arith.mulf %54, %54 : vector<1x16x38xf32>
    %72 = arith.mulf %71, %70 : vector<1x16x38xf32>
    %73 = tpu.iota {dimensions = array<i32: 2>} : vector<1x1x38xi32>
    %false = arith.constant false
    %74 = vector.broadcast %false : i1 to vector<1x1x38xi1>
    %c0_i32 = arith.constant 0 : i32
    %75 = vector.broadcast %c0_i32 : i32 to vector<1x1x38xi32>
    %76 = arith.cmpi sge, %73, %75 : vector<1x1x38xi32>
    %c16_i32 = arith.constant 16 : i32
    %77 = vector.broadcast %c16_i32 : i32 to vector<1x1x38xi32>
    %78 = arith.cmpi slt, %73, %77 : vector<1x1x38xi32>
    %79 = arith.andi %76, %78 : vector<1x1x38xi1>
    %80 = arith.ori %74, %79 : vector<1x1x38xi1>
    %c19_i32 = arith.constant 19 : i32
    %81 = vector.broadcast %c19_i32 : i32 to vector<1x1x38xi32>
    %82 = arith.cmpi sge, %73, %81 : vector<1x1x38xi32>
    %c35_i32 = arith.constant 35 : i32
    %83 = vector.broadcast %c35_i32 : i32 to vector<1x1x38xi32>
    %84 = arith.cmpi slt, %73, %83 : vector<1x1x38xi32>
    %85 = arith.andi %82, %84 : vector<1x1x38xi1>
    %86 = arith.ori %80, %85 : vector<1x1x38xi1>
    %cst_13 = arith.constant 0.000000e+00 : f32
    %87 = vector.shape_cast %86 : vector<1x1x38xi1> to vector<1x1x38xi1>
    %88 = vector.broadcast %87 : vector<1x1x38xi1> to vector<1x16x38xi1>
    %89 = vector.broadcast %cst_13 : f32 to vector<1x16x38xf32>
    %90 = arith.select %88, %72, %89 : vector<1x16x38xi1>, vector<1x16x38xf32>
    %cst_14 = arith.constant dense<0.000000e+00> : vector<1x38xf32>
    %91 = vector.multi_reduction <add>, %90, %cst_14 [1] : vector<1x16x38xf32> to vector<1x38xf32>
    %92 = vector.shape_cast %91 : vector<1x38xf32> to vector<1x1x38xf32>
    %c0_15 = arith.constant 0 : index
    %c0_16 = arith.constant 0 : index
    %c0_17 = arith.constant 0 : index
    %93 = vector.load %arg3[%c0_15, %c0_16, %c0_17] : memref<1x1x38xf32, #tpu.memory_space<vmem>>, vector<1x1x38xf32>
    tpu.vector_store %arg3[%c0_15, %c0_16, %c0_17], %92 {strides = array<i32>} : memref<1x1x38xf32, #tpu.memory_space<vmem>>, vector<1x1x38xf32>,
    return
  }
  func.func @transform_0(%arg0: i32) -> (i32, i32, i32, i32) {
    %c0_i32 = arith.constant 0 : i32
    %c0_i32_0 = arith.constant 0 : i32
    %c0_i32_1 = arith.constant 0 : i32
    %c0_i32_2 = arith.constant 0 : i32
    return %arg0, %c0_i32, %c0_i32_0, %c0_i32_1 : i32, i32, i32, i32
  }
  func.func @transform_1(%arg0: i32) -> (i32, i32, i32, i32) {
    %c0_i32 = arith.constant 0 : i32
    %c0_i32_0 = arith.constant 0 : i32
    %c0_i32_1 = arith.constant 0 : i32
    %c0_i32_2 = arith.constant 0 : i32
    return %arg0, %c0_i32, %c0_i32_0, %c0_i32_1 : i32, i32, i32, i32
  }
  func.func @transform_2(%arg0: i32) -> (i32, i32, i32) {
    %c0_i32 = arith.constant 0 : i32
    %c0_i32_0 = arith.constant 0 : i32
    %c0_i32_1 = arith.constant 0 : i32
    return %arg0, %c0_i32, %c0_i32_0 : i32, i32, i32
  }
}

</mosaic_0001>

<bundles_post_ra>
// kernel: lncc_loss.1
= control target key start
LH: loop header
LB: loop body
LE: loop exit
PB: predicated region body
PF: predicated region fallthrough
CT: control target
= control target key end

     0   :  { %s605_s13 = smov 3   ;;  %vm61_vm0 = vcmask 23552   ;;  %vm72_vm1 = vcmask 334848   ;;  %s608_s18 = smov 126   ;;  %vm273_vm2 = vcmask 1042432   ;;  %vm324_vm3 = vcmask 1046528   ;;  %s857_s0 = inlined_call_operand.vmem [shape: f32[1,1,16,38], index: 0, kind: input, shape index: {}]   ;;  %s858_s1 = inlined_call_operand.vmem [shape: f32[1,1,16,38], index: 1, kind: input, shape index: {}]   ;;  %s859_s2 = inlined_call_operand.vmem [shape: f32[1,1,38], index: 2, kind: output, shape index: {}]  }
   0x1   :  { %v11_v0 = vld [vmem:[%s857_s0] sm:$0xff]  ;;  %v12_v2 = vld [vmem:[%s857_s0 + $0x8] sm:$0xff]  ;;  %s606_s0 = smov 127   ;;  %s609_s19 = smov 124   ;;  %vm395_vm4 = vcmask 1045504   ;;  %vm441_vm5 = vcmask 1043456  }
   0x2   :  { %v13_v1 = vld [vmem:[%s858_s1] sm:$0xff]  ;;  %31 = vrot.lane.b32.xlu0 %v11_v0, %s605_s13  ;;  %v14_v3 = vld [vmem:[%s858_s1 + $0x8] sm:$0xff]  ;;  %v15_v4 = vmul.f32 %v11_v0, %v11_v0  ;;  %v16_v5 = vmul.f32 %v12_v2, %v12_v2  ;;  %s607_s1 = smov 122   ;;  %vm487_vm6 = vcmask 1041408   ;;  %vm580_vm12 = vcmask 310272  }
   0x3   :  { %35 = vrot.lane.b32.xlu1 %v13_v1, %s605_s13  ;;  %v17_v6 = vmul.f32 %v13_v1, %v13_v1  ;;  %v18_v7 = vmul.f32 %v14_v3, %v14_v3  ;;  %v19_v8 = vmul.f32 %v13_v1, %v11_v0  ;;  %v20_v9 = vmul.f32 %v14_v3, %v12_v2 }
   0x4   :  { %vm590_vm13 = vcmask 303104  }
   0x6   :  { %33 = vrot.lane.b32.xlu0 %v12_v2, %s605_s13 }
   0x7   :  { %37 = vrot.lane.b32.xlu1 %v14_v3, %s605_s13 }
   0xa   :  { %39 = vrot.lane.b32.xlu0 %v15_v4, %s605_s13 }
   0xb   :  { %41 = vrot.lane.b32.xlu1 %v16_v5, %s605_s13 }
   0xe   :  { %43 = vrot.lane.b32.xlu0 %v17_v6, %s605_s13 }
   0xf   :  { %45 = vrot.lane.b32.xlu1 %v18_v7, %s605_s13 }
  0x12   :  { %47 = vrot.lane.b32.xlu0 %v19_v8, %s605_s13 }
  0x13   :  { %49 = vrot.lane.b32.xlu1 %v20_v9, %s605_s13 }
  0x74   :  { %v32_v10 = vpop.permute.xlu0 %31 }
  0x75   :  { %v36_v11 = vpop.permute.xlu1 %35  ;;  %v62_v12 = vsel %vm61_vm0, 0.0, %v32_v10 }
  0x76   :  { %v64_v13 = vsel %vm61_vm0, 0.0, %v36_v11  ;;  %v73_v14 = vsel %vm72_vm1, %v62_v12, 0.0 }
  0x77   :  { %93 = vrot.lane.b32.xlu0 %v73_v14, %s606_s0  ;;  %v75_v15 = vsel %vm72_vm1, %v64_v13, 0.0 }
  0x78   :  { %v34_v16 = vpop.permute.xlu0 %33 }
  0x79   :  { %v38_v17 = vpop.permute.xlu1 %37  ;;  %v63_v18 = vsel %vm61_vm0, 0.0, %v34_v16 }
  0x7a   :  { %v65_v19 = vsel %vm61_vm0, 0.0, %v38_v17  ;;  %v74_v20 = vsel %vm72_vm1, %v63_v18, 0.0 }
  0x7b   :  { %95 = vrot.lane.b32.xlu1 %v74_v20, %s606_s0  ;;  %97 = vrot.lane.b32.xlu0 %v75_v15, %s606_s0  ;;  %v76_v21 = vsel %vm72_vm1, %v65_v19, 0.0 }
  0x7c   :  { %v40_v22 = vpop.permute.xlu0 %39 }
  0x7d   :  { %v42_v23 = vpop.permute.xlu1 %41  ;;  %v66_v24 = vsel %vm61_vm0, 0.0, %v40_v22 }
  0x7e   :  { %v67_v25 = vsel %vm61_vm0, 0.0, %v42_v23  ;;  %v77_v26 = vsel %vm72_vm1, %v66_v24, 0.0 }
  0x7f   :  { %99 = vrot.lane.b32.xlu1 %v76_v21, %s606_s0  ;;  %101 = vrot.lane.b32.xlu0 %v77_v26, %s606_s0  ;;  %v78_v27 = vsel %vm72_vm1, %v67_v25, 0.0 }
  0x80   :  { %v44_v28 = vpop.permute.xlu0 %43 }
  0x81   :  { %v46_v29 = vpop.permute.xlu1 %45  ;;  %v68_v30 = vsel %vm61_vm0, 0.0, %v44_v28 }
  0x82   :  { %v69_v31 = vsel %vm61_vm0, 0.0, %v46_v29  ;;  %v79_v32 = vsel %vm72_vm1, %v68_v30, 0.0 }
  0x83   :  { %103 = vrot.lane.b32.xlu1 %v78_v27, %s606_s0  ;;  %105 = vrot.lane.b32.xlu0 %v79_v32, %s606_s0  ;;  %v80_v33 = vsel %vm72_vm1, %v69_v31, 0.0 }
  0x84   :  { %v48_v34 = vpop.permute.xlu0 %47 }
  0x85   :  { %v70_v35 = vsel %vm61_vm0, 0.0, %v48_v34  ;;  %v50_v36 = vpop.permute.xlu1 %49 }
  0x86   :  { %v81_v37 = vsel %vm72_vm1, %v70_v35, 0.0  ;;  %v71_v38 = vsel %vm61_vm0, 0.0, %v50_v36 }
  0x87   :  { %107 = vrot.lane.b32.xlu1 %v80_v33, %s606_s0  ;;  %223 = vrot.lane.b32.xlu0 %v73_v14, %s607_s1  ;;  %v82_v39 = vsel %vm72_vm1, %v71_v38, 0.0 }
  0x8b   :  { %225 = vrot.lane.b32.xlu1 %v74_v20, %s607_s1  ;;  %109 = vrot.lane.b32.xlu0 %v81_v37, %s606_s0 }
  0x8f   :  { %111 = vrot.lane.b32.xlu1 %v82_v39, %s606_s0  ;;  %227 = vrot.lane.b32.xlu0 %v75_v15, %s607_s1 }
  0x93   :  { %229 = vrot.lane.b32.xlu1 %v76_v21, %s607_s1  ;;  %231 = vrot.lane.b32.xlu0 %v77_v26, %s607_s1 }
  0x97   :  { %233 = vrot.lane.b32.xlu1 %v78_v27, %s607_s1 }
  0xe9   :  { %v94_v40 = vpop.permute.xlu0 %93 }
  0xea   :  { %v123_v41 = vadd.f32 %v94_v40, %v73_v14 }
  0xec   :  { %143 = vrot.lane.b32.xlu0 %v123_v41, %s608_s18 }
  0xed   :  { %v96_v42 = vpop.permute.xlu1 %95  ;;  %v98_v43 = vpop.permute.xlu0 %97 }
  0xee   :  { %v124_v44 = vadd.f32 %v96_v42, %v74_v20  ;;  %v125_v45 = vadd.f32 %v98_v43, %v75_v15 }
  0xf0   :  { %145 = vrot.lane.b32.xlu1 %v124_v44, %s608_s18  ;;  %147 = vrot.lane.b32.xlu0 %v125_v45, %s608_s18 }
  0xf1   :  { %v100_v46 = vpop.permute.xlu1 %99  ;;  %v102_v48 = vpop.permute.xlu0 %101 }
  0xf2   :  { %v126_v47 = vadd.f32 %v100_v46, %v76_v21  ;;  %v680_v50 = vadd.f32 %v102_v48, %v77_v26 }
  0xf4   :  { %149 = vrot.lane.b32.xlu1 %v126_v47, %s608_s18  ;;  %183 = vrot.lane.b32.xlu0 %v123_v41, %s609_s19 }
  0xf5   :  { %v104_v49 = vpop.permute.xlu1 %103  ;;  %v106_v51 = vpop.permute.xlu0 %105 }
  0xf6   :  { %v685_v52 = vadd.f32 %v104_v49, %v78_v27  ;;  %v687_v53 = vadd.f32 %v106_v51, %v79_v32 }
  0xf8   :  { %185 = vrot.lane.b32.xlu1 %v124_v44, %s609_s19  ;;  %187 = vrot.lane.b32.xlu0 %v125_v45, %s609_s19 }
  0xf9   :  { %v108_v54 = vpop.permute.xlu1 %107  ;;  %v224_v56 = vpop.permute.xlu0 %223 }
  0xfa   :  { %v693_v55 = vadd.f32 %v108_v54, %v80_v33 }
  0xfc   :  { %189 = vrot.lane.b32.xlu1 %v126_v47, %s609_s19  ;;  %151 = vrot.lane.b32.xlu0 %v680_v50, %s608_s18 }
  0xfd   :  { %v226_v57 = vpop.permute.xlu1 %225  ;;  %v110_v58 = vpop.permute.xlu0 %109 }
  0xfe   :  { %v706_v59 = vadd.f32 %v110_v58, %v81_v37 }
 0x100   :  { %153 = vrot.lane.b32.xlu1 %v685_v52, %s608_s18  ;;  %155 = vrot.lane.b32.xlu0 %v687_v53, %s608_s18 }
 0x101   :  { %v112_v60 = vpop.permute.xlu1 %111  ;;  %v228_v62 = vpop.permute.xlu0 %227 }
 0x102   :  { %v711_v61 = vadd.f32 %v112_v60, %v82_v39 }
 0x104   :  { %157 = vrot.lane.b32.xlu1 %v693_v55, %s608_s18  ;;  %191 = vrot.lane.b32.xlu0 %v680_v50, %s609_s19 }
 0x105   :  { %v230_v63 = vpop.permute.xlu1 %229  ;;  %v721_v0 = vpop.permute.xlu0 %231 }
 0x108   :  { %193 = vrot.lane.b32.xlu1 %v685_v52, %s609_s19  ;;  %195 = vrot.lane.b32.xlu0 %v687_v53, %s609_s19 }
 0x109   :  { %v723_v1 = vpop.permute.xlu1 %233 }
 0x10c   :  { %197 = vrot.lane.b32.xlu1 %v693_v55, %s609_s19  ;;  %235 = vrot.lane.b32.xlu0 %v79_v32, %s607_s1 }
 0x110   :  { %237 = vrot.lane.b32.xlu1 %v80_v33, %s607_s1  ;;  %159 = vrot.lane.b32.xlu0 %v706_v59, %s608_s18 }
 0x114   :  { %161 = vrot.lane.b32.xlu1 %v711_v61, %s608_s18  ;;  %199 = vrot.lane.b32.xlu0 %v706_v59, %s609_s19 }
 0x118   :  { %201 = vrot.lane.b32.xlu1 %v711_v61, %s609_s19  ;;  %239 = vrot.lane.b32.xlu0 %v81_v37, %s607_s1 }
 0x11c   :  { %241 = vrot.lane.b32.xlu1 %v82_v39, %s607_s1 }
 0x15e   :  { %v144_v2 = vpop.permute.xlu0 %143 }
 0x15f   :  { %v173_v5 = vadd.f32 %v144_v2, %v123_v41 }
 0x162   :  { %v146_v3 = vpop.permute.xlu1 %145  ;;  %v148_v4 = vpop.permute.xlu0 %147 }
 0x163   :  { %v174_v9 = vadd.f32 %v146_v3, %v124_v44  ;;  %v175_v10 = vadd.f32 %v148_v4, %v125_v45 }
 0x166   :  { %v150_v6 = vpop.permute.xlu1 %149  ;;  %v184_v7 = vpop.permute.xlu0 %183 }
 0x167   :  { %v213_v8 = vadd.f32 %v184_v7, %v173_v5  ;;  %v176_v17 = vadd.f32 %v150_v6, %v126_v47 }
 0x169   :  { %v253_v11 = vadd.f32 %v224_v56, %v213_v8 }
 0x16a   :  { %v186_v12 = vpop.permute.xlu1 %185  ;;  %v188_v13 = vpop.permute.xlu0 %187 }
 0x16b   :  { %v274_v14 = vrot.slane %v253_v11, 5  ;;  %v214_v15 = vadd.f32 %v186_v12, %v174_v9  ;;  %v215_v16 = vadd.f32 %v188_v13, %v175_v10 }
 0x16d   :  { %v254_v18 = vadd.f32 %v226_v57, %v214_v15  ;;  %v255_v19 = vadd.f32 %v228_v62, %v215_v16  ;;  %v304_v22 = vsel %vm273_vm2, 0.0, %v274_v14 }
 0x16e   :  { %v190_v20 = vpop.permute.xlu1 %189  ;;  %v152_v21 = vpop.permute.xlu0 %151  ;;  %v325_v29 = vrot.slane %v304_v22, 1  ;;  %v488_v13 = vrot.slane %v304_v22, 6 }
 0x16f   :  { %v275_v23 = vrot.slane %v254_v18, 5  ;;  %v277_v24 = vrot.slane %v255_v19, 5  ;;  %v216_v25 = vadd.f32 %v190_v20, %v176_v17 }
 0x171   :  { %v276_v26 = vsel %vm273_vm2, %v274_v14, %v275_v23  ;;  %v309_v27 = vsel %vm273_vm2, %v275_v23, 0.0  ;;  %v256_v28 = vadd.f32 %v230_v63, %v216_v25  ;;  %v729_v32 = vsel %vm273_vm2, 0.0, %v277_v24 }
 0x172   :  { %v326_v30 = vrot.slane %v276_v26, 1  ;;  %v328_v31 = vrot.slane %v309_v27, 1  ;;  %v154_v33 = vpop.permute.xlu1 %153  ;;  %v156_v34 = vpop.permute.xlu0 %155  ;;  %v330_v41 = vrot.slane %v729_v32, 1  ;;  %v489_v63 = vrot.slane %v276_v26, 6 }
 0x173   :  { %v278_v35 = vrot.slane %v256_v28, 5  ;;  %v491_v2 = vrot.slane %v309_v27, 6  ;;  %v177_v23 = vadd.f32 %v152_v21, %v680_v50 }
 0x174   :  { %v327_v36 = vsel %vm324_vm3, %v325_v29, %v326_v30  ;;  %v329_v37 = vsel %vm324_vm3, %v326_v30, %v328_v31  ;;  %v367_v38 = vadd.f32 %v328_v31, %v309_v27  ;;  %v490_v19 = vsel %vm487_vm6, %v488_v13, %v489_v63 }
 0x175   :  { %v365_v39 = vadd.f32 %v327_v36, %v304_v22  ;;  %v366_v40 = vadd.f32 %v329_v37, %v276_v26  ;;  %v735_v42 = vsel %vm273_vm2, %v277_v24, %v278_v35  ;;  %v738_v45 = vsel %vm273_vm2, %v278_v35, 0.0 }
 0x176   :  { %v399_v43 = vrot.slane %v367_v38, 2  ;;  %v445_v44 = vrot.slane %v367_v38, 4  ;;  %v331_v46 = vrot.slane %v735_v42, 1  ;;  %v158_v47 = vpop.permute.xlu1 %157  ;;  %v192_v48 = vpop.permute.xlu0 %191  ;;  %v333_v58 = vrot.slane %v738_v45, 1 }
 0x177   :  { %v396_v49 = vrot.slane %v365_v39, 2  ;;  %v397_v51 = vrot.slane %v366_v40, 2  ;;  %v442_v54 = vrot.slane %v365_v39, 4  ;;  %v443_v56 = vrot.slane %v366_v40, 4 }
 0x178   :  { %v332_v57 = vsel %vm324_vm3, %v330_v41, %v331_v46  ;;  %v334_v5 = vsel %vm324_vm3, %v331_v46, %v333_v58  ;;  %v370_v12 = vadd.f32 %v333_v58, %v738_v45  ;;  %v492_v20 = vsel %vm487_vm6, %v489_v63, %v491_v2 }
 0x179   :  { %v398_v60 = vsel %vm395_vm4, %v396_v49, %v397_v51  ;;  %v400_v62 = vsel %vm395_vm4, %v397_v51, %v399_v43  ;;  %v368_v6 = vadd.f32 %v332_v57, %v729_v32  ;;  %v444_v9 = vsel %vm441_vm5, %v442_v54, %v443_v56 }
 0x17a   :  { %v431_v3 = vadd.f32 %v398_v60, %v365_v39  ;;  %v432_v4 = vadd.f32 %v400_v62, %v366_v40  ;;  %v194_v7 = vpop.permute.xlu1 %193  ;;  %v196_v8 = vpop.permute.xlu0 %195  ;;  %v446_v10 = vsel %vm441_vm5, %v443_v56, %v445_v44  ;;  %v369_v11 = vadd.f32 %v334_v5, %v735_v42 }
 0x17b   :  { %v401_v16 = vrot.slane %v368_v6, 2  ;;  %v404_v18 = vrot.slane %v370_v12, 2  ;;  %v178_v24 = vadd.f32 %v154_v33, %v685_v52  ;;  %v179_v22 = vadd.f32 %v156_v34, %v687_v53 }
 0x17c   :  { %v477_v14 = vadd.f32 %v444_v9, %v431_v3  ;;  %v478_v15 = vadd.f32 %v446_v10, %v432_v4  ;;  %v402_v17 = vrot.slane %v369_v11, 2  ;;  %v180_v28 = vadd.f32 %v158_v47, %v693_v55 }
 0x17d   :  { %v447_v31 = vrot.slane %v368_v6, 4  ;;  %v448_v35 = vrot.slane %v369_v11, 4  ;;  %v217_v37 = vadd.f32 %v192_v48, %v177_v23  ;;  %v218_v50 = vadd.f32 %v194_v7, %v178_v24 }
 0x17e   :  { %v198_v25 = vpop.permute.xlu1 %197  ;;  %v403_v26 = vsel %vm395_vm4, %v401_v16, %v402_v17  ;;  %v405_v27 = vsel %vm395_vm4, %v402_v17, %v404_v18  ;;  %v759_v29 = vadd.f32 %v490_v19, %v477_v14  ;;  %v761_v30 = vadd.f32 %v492_v20, %v478_v15  ;;  %v236_v36 = vpop.permute.xlu0 %235 }
 0x17f   :  { %v219_v21 = vadd.f32 %v196_v8, %v179_v22  ;;  %v220_v52 = vadd.f32 %v198_v25, %v180_v28  ;;  %v433_v33 = vadd.f32 %v403_v26, %v368_v6  ;;  %v434_v38 = vadd.f32 %v405_v27, %v369_v11 }
 0x180   :  { %v450_v39 = vrot.slane %v370_v12, 4  ;;  %v257_v41 = vadd.f32 %v721_v0, %v217_v37  ;;  %v258_v53 = vadd.f32 %v723_v1, %v218_v50  ;;  %v539_v43 = vmul.f32 %v759_v29, %v759_v29 }
 0x181   :  { %v259_v55 = vadd.f32 %v236_v36, %v219_v21  ;;  %v449_v44 = vsel %vm441_vm5, %v447_v31, %v448_v35  ;;  %v494_v46 = vrot.slane %v735_v42, 6  ;;  %v496_v47 = vrot.slane %v738_v45, 6 }
 0x182   :  { %v238_v40 = vpop.permute.xlu1 %237  ;;  %v540_v48 = vmul.f32 %v761_v30, %v761_v30  ;;  %v280_v49 = vrot.slane %v257_v41, 5  ;;  %v281_v51 = vrot.slane %v258_v53, 5  ;;  %v493_v0 = vrot.slane %v729_v32, 6  ;;  %v160_v11 = vpop.permute.xlu0 %159 }
 0x183   :  { %v260_v34 = vadd.f32 %v238_v40, %v220_v52  ;;  %v283_v54 = vrot.slane %v259_v55, 5  ;;  %v451_v1 = vsel %vm441_vm5, %v448_v35, %v450_v39  ;;  %v479_v56 = vadd.f32 %v449_v44, %v433_v33 }
 0x184   :  { %v480_v58 = vadd.f32 %v451_v1, %v434_v38  ;;  %v775_v60 = vsel %vm273_vm2, 0.0, %v280_v49  ;;  %v778_v42 = vsel %vm273_vm2, %v280_v49, %v281_v51  ;;  %v781_v45 = vsel %vm273_vm2, %v281_v51, 0.0 }
 0x185   :  { %v284_v57 = vrot.slane %v260_v34, 5  ;;  %v495_v62 = vsel %vm487_vm6, %v493_v0, %v494_v46  ;;  %v335_v63 = vrot.slane %v775_v60, 1  ;;  %v336_v32 = vrot.slane %v778_v42, 1 }
 0x186   :  { %v338_v2 = vrot.slane %v781_v45, 1  ;;  %v787_v3 = vmul.f32 0.020408163, %v539_v43  ;;  %v789_v4 = vmul.f32 0.020408163, %v540_v48  ;;  %v497_v5 = vsel %vm487_vm6, %v494_v46, %v496_v47  ;;  %v162_v20 = vpop.permute.xlu1 %161  ;;  %v200_v38 = vpop.permute.xlu0 %199 }
 0x187   :  { %v793_v6 = vsel %vm273_vm2, 0.0, %v283_v54  ;;  %v337_v7 = vsel %vm324_vm3, %v335_v63, %v336_v32  ;;  %v799_v10 = vsel %vm273_vm2, %v283_v54, %v284_v57  ;;  %v801_v12 = vadd.f32 %v495_v62, %v479_v56 }
 0x188   :  { %v339_v8 = vsel %vm324_vm3, %v336_v32, %v338_v2  ;;  %v373_v9 = vadd.f32 %v338_v2, %v781_v45  ;;  %v803_v13 = vadd.f32 %v497_v5, %v480_v58  ;;  %v371_v14 = vadd.f32 %v337_v7, %v775_v60 }
 0x189   :  { %v372_v15 = vadd.f32 %v339_v8, %v778_v42  ;;  %v340_v17 = vrot.slane %v793_v6, 1  ;;  %v312_v18 = vsel %vm273_vm2, %v284_v57, 0.0  ;;  %v341_v19 = vrot.slane %v799_v10, 1 }
 0x18a   :  { %v409_v16 = vrot.slane %v373_v9, 2  ;;  %v406_v23 = vrot.slane %v371_v14, 2  ;;  %v455_v25 = vrot.slane %v373_v9, 4  ;;  %v181_v26 = vadd.f32 %v160_v11, %v706_v59  ;;  %v202_v46 = vpop.permute.xlu1 %201  ;;  %v240_v5 = vpop.permute.xlu0 %239 }
 0x18b   :  { %v407_v24 = vrot.slane %v372_v15, 2  ;;  %v452_v27 = vrot.slane %v371_v14, 4  ;;  %v453_v22 = vrot.slane %v372_v15, 4  ;;  %v342_v28 = vsel %vm324_vm3, %v340_v17, %v341_v19 }
 0x18c   :  { %v343_v31 = vrot.slane %v312_v18, 1  ;;  %v545_v35 = vmul.f32 %v801_v12, %v801_v12  ;;  %v546_v36 = vmul.f32 %v803_v13, %v803_v13  ;;  %v374_v59 = vadd.f32 %v342_v28, %v793_v6 }
 0x18d   :  { %v408_v37 = vsel %vm395_vm4, %v406_v23, %v407_v24  ;;  %v410_v50 = vsel %vm395_vm4, %v407_v24, %v409_v16  ;;  %v499_v39 = vrot.slane %v778_v42, 6  ;;  %v501_v40 = vrot.slane %v781_v45, 6 }
 0x18e   :  { %v435_v21 = vadd.f32 %v408_v37, %v371_v14  ;;  %v436_v52 = vadd.f32 %v410_v50, %v372_v15  ;;  %v344_v33 = vsel %vm324_vm3, %v341_v19, %v343_v31  ;;  %v376_v53 = vadd.f32 %v343_v31, %v312_v18 }
 0x18f   :  { %v375_v41 = vadd.f32 %v344_v33, %v799_v10  ;;  %v454_v55 = vsel %vm441_vm5, %v452_v27, %v453_v22  ;;  %v456_v34 = vsel %vm441_vm5, %v453_v22, %v455_v25  ;;  %v411_v43 = vrot.slane %v374_v59, 2 }
 0x190   :  { %v457_v44 = vrot.slane %v374_v59, 4  ;;  %v414_v48 = vrot.slane %v376_v53, 2  ;;  %v460_v51 = vrot.slane %v376_v53, 4  ;;  %v498_v54 = vrot.slane %v775_v60, 6 }
 0x191   :  { %v412_v47 = vrot.slane %v375_v41, 2  ;;  %v458_v49 = vrot.slane %v375_v41, 4  ;;  %v481_v0 = vadd.f32 %v454_v55, %v435_v21  ;;  %v482_v1 = vadd.f32 %v456_v34, %v436_v52 }
 0x192   :  { %v503_v56 = vrot.slane %v793_v6, 6  ;;  %v504_v42 = vrot.slane %v799_v10, 6  ;;  %v506_v45 = vrot.slane %v312_v18, 6  ;;  %v500_v62 = vsel %vm487_vm6, %v498_v54, %v499_v39  ;;  %v242_v10 = vpop.permute.xlu1 %241 }
 0x193   :  { %v413_v57 = vsel %vm395_vm4, %v411_v43, %v412_v47  ;;  %v415_v58 = vsel %vm395_vm4, %v412_v47, %v414_v48  ;;  %v502_v63 = vsel %vm487_vm6, %v499_v39, %v501_v40  ;;  %v459_v60 = vsel %vm441_vm5, %v457_v44, %v458_v49 }
 0x194   :  { %v437_v32 = vadd.f32 %v413_v57, %v374_v59  ;;  %v438_v2 = vadd.f32 %v415_v58, %v375_v41  ;;  %v461_v7 = vsel %vm441_vm5, %v458_v49, %v460_v51  ;;  %v182_v6 = vadd.f32 %v162_v20, %v711_v61 }
 0x195   :  { %v221_v8 = vadd.f32 %v200_v38, %v181_v26  ;;  %v527_v9 = vadd.f32 %v500_v62, %v481_v0  ;;  %v528_v11 = vadd.f32 %v502_v63, %v482_v1  ;;  %v505_v16 = vsel %vm487_vm6, %v503_v56, %v504_v42 }
 0x196   :  { %v483_v14 = vadd.f32 %v459_v60, %v437_v32  ;;  %v484_v15 = vadd.f32 %v461_v7, %v438_v2  ;;  %v507_v17 = vsel %vm487_vm6, %v504_v42, %v506_v45  ;;  %v222_v18 = vadd.f32 %v202_v46, %v182_v6 }
 0x197   :  { %v261_v19 = vadd.f32 %v240_v5, %v221_v8  ;;  %v547_v25 = vmul.f32 0.020408163, %v545_v35  ;;  %v548_v27 = vmul.f32 0.020408163, %v546_v36  ;;  %v543_v61 = vsub.f32 %v527_v9, %v787_v3 }
 0x198   :  { %v529_v23 = vadd.f32 %v505_v16, %v483_v14  ;;  %v530_v24 = vadd.f32 %v507_v17, %v484_v15  ;;  %v262_v28 = vadd.f32 %v242_v10, %v222_v18  ;;  %v544_v20 = vsub.f32 %v528_v11, %v789_v4 }
 0x199   :  { %v286_v22 = vrot.slane %v261_v19, 5  ;;  %v567_v49 = vlaneseq  ;;  %v533_v62 = vmul.f32 %v801_v12, %v759_v29  ;;  %v534_v2 = vmul.f32 %v803_v13, %v761_v30 }
 0x19a   :  { %v549_v26 = vsub.f32 %v529_v23, %v547_v25  ;;  %v550_v31 = vsub.f32 %v530_v24, %v548_v27  ;;  %v287_v50 = vrot.slane %v262_v28, 5 }
 0x19b   :  { %v308_v37 = vsel %vm273_vm2, 0.0, %v286_v22  ;;  %v568_v5 = vand.u32 127, %v567_v49  ;;  %v535_v9 = vmul.f32 0.020408163, %v533_v62  ;;  %v536_v14 = vmul.f32 0.020408163, %v534_v2 }
 0x19c   :  { %v551_v21 = vmul.f32 %v549_v26, %v543_v61  ;;  %v552_v52 = vmul.f32 %v550_v31, %v544_v20  ;;  %v345_v33 = vrot.slane %v308_v37, 1  ;;  %v288_v59 = vsel %vm273_vm2, %v286_v22, %v287_v50 }
 0x19d   :  { %v313_v38 = vsel %vm273_vm2, %v287_v50, 0.0  ;;  %v346_v39 = vrot.slane %v288_v59, 1  ;;  %v509_v0 = vrot.slane %v288_v59, 6  ;;  %v508_v58 = vrot.slane %v308_v37, 6 }
 0x19e   :  { %v553_v35 = vadd.f32 1e-05, %v551_v21  ;;  %v554_v36 = vadd.f32 1e-05, %v552_v52  ;;  %v348_v40 = vrot.slane %v313_v38, 1  ;;  %v511_v57 = vrot.slane %v313_v38, 6 }
 0x19f   :  { %v347_v3 = vsel %vm324_vm3, %v345_v33, %v346_v39  ;;  %v510_v60 = vsel %vm487_vm6, %v508_v58, %v509_v0  ;;  %vm572_vm7 = vcmp.ge.s32.totalorder %v568_v5, 19  ;;  %vm573_vm8 = vcmp.lt.s32.totalorder %v568_v5, 35 }
 0x1a0   :  { %601 = vrcp.f32 %v553_v35  ;;  %v349_v4 = vsel %vm324_vm3, %v346_v39, %v348_v40  ;;  %v379_v41 = vadd.f32 %v348_v40, %v313_v38  ;;  %v377_v53 = vadd.f32 %v347_v3, %v308_v37  ;;  %vm574_vm10 = vmand %vm572_vm7, %vm573_vm8 }
 0x1a1   :  { %603 = vrcp.f32 %v554_v36  ;;  %v378_v55 = vadd.f32 %v349_v4, %v288_v59  ;;  %v512_v7 = vsel %vm487_vm6, %v509_v0, %v511_v57  ;;  %vm570_vm9 = vcmp.lt.s32.totalorder %v568_v5, 16 }
 0x1a2   :  { %v419_v34 = vrot.slane %v379_v41, 2  ;;  %v465_v43 = vrot.slane %v379_v41, 4  ;;  %v416_v44 = vrot.slane %v377_v53, 2  ;;  %v462_v47 = vrot.slane %v377_v53, 4  ;;  %vm575_vm11 = vmor %vm570_vm9, %vm574_vm10 }
 0x1a3   :  { %v417_v46 = vrot.slane %v378_v55, 2  ;;  %v463_v48 = vrot.slane %v378_v55, 4 }
 0x1a5   :  { %v418_v51 = vsel %vm395_vm4, %v416_v44, %v417_v46  ;;  %v420_v54 = vsel %vm395_vm4, %v417_v46, %v419_v34  ;;  %v464_v42 = vsel %vm441_vm5, %v462_v47, %v463_v48  ;;  %v466_v45 = vsel %vm441_vm5, %v463_v48, %v465_v43 }
 0x1a6   :  { %v439_v1 = vadd.f32 %v418_v51, %v377_v53  ;;  %v440_v56 = vadd.f32 %v420_v54, %v378_v55 }
 0x1a8   :  { %v485_v63 = vadd.f32 %v464_v42, %v439_v1  ;;  %v486_v32 = vadd.f32 %v466_v45, %v440_v56 }
 0x1aa   :  { %v531_v6 = vadd.f32 %v510_v60, %v485_v63  ;;  %v532_v8 = vadd.f32 %v512_v7, %v486_v32 }
 0x1ac   :  { %v537_v29 = vsub.f32 %v531_v6, %v535_v9  ;;  %v538_v16 = vsub.f32 %v532_v8, %v536_v14 }
 0x1ad   :  { %v602_v11 = vpop.eup %601 }
 0x1ae   :  { %v604_v15 = vpop.eup %603  ;;  %v557_v10 = vmul.f32 %v602_v11, %v553_v35  ;;  %v563_v18 = vmul.f32 %v537_v29, %v537_v29  ;;  %v564_v23 = vmul.f32 %v538_v16, %v538_v16 }
 0x1af   :  { %v558_v12 = vmul.f32 %v604_v15, %v554_v36 }
 0x1b0   :  { %v559_v17 = vsub.f32 2.0, %v557_v10 }
 0x1b1   :  { %v560_v30 = vsub.f32 2.0, %v558_v12 }
 0x1b2   :  { %v561_v13 = vmul.f32 %v602_v11, %v559_v17 }
 0x1b3   :  { %v562_v19 = vmul.f32 %v604_v15, %v560_v30 }
 0x1b4   :  { %v565_v24 = vmul.f32 %v563_v18, %v561_v13 }
 0x1b5   :  { %v566_v25 = vmul.f32 %v564_v23, %v562_v19 }
 0x1b6   :  { %v578_v27 = vsel %vm575_vm11, %v565_v24, 0.0 }
 0x1b7   :  { %v579_v22 = vsel %vm575_vm11, %v566_v25, 0.0  ;;  %v581_v28 = vsel %vm580_vm12, %v578_v27, 0.0 }
 0x1b8   :  { %v582_v61 = vsel %vm580_vm12, %v579_v22, 0.0 }
 0x1b9   :  { %v583_v20 = vadd.f32 %v582_v61, %v581_v28 }
 0x1bb   :  { %v584_v26 = vrot.slane %v583_v20, 4 }
 0x1bd   :  { %v585_v31 = vadd.f32 %v584_v26, %v583_v20 }
 0x1bf   :  { %v586_v37 = vrot.slane %v585_v31, 2 }
 0x1c1   :  { %v587_v50 = vadd.f32 %v586_v37, %v585_v31 }
 0x1c3   :  { %v588_v21 = vrot.slane %v587_v50, 1 }
 0x1c5   :  { %v589_v52 = vadd.f32 %v588_v21, %v587_v50 }
 0x1c7   :  { %591 = vst.msk [vmem:[%s859_s2] sm:$0x1] %vm590_vm13, %v589_v52 }

</bundles_post_ra>
